<compile_context>
chip_gen: v5e
topology: v5e:2x2
jax: 0.10.0
libtpu: 0.0.40
codegen_flags: <defaults>
</compile_context>

<pallas_src>
import functools

import jax
import jax.numpy as jnp
import numpy as np
from jax.experimental import pallas as pl
from jax.experimental.pallas import tpu as pltpu


# ----------------------------- fused kernel ---------------------------------
def fused_kernel(nodes_ref, gridp_ref, gridv_ref,
                 w_in_ref, w_t_ref, w_tv_ref, b_emb_ref,
                 w_ih_ref, b_gates_ref, w_hh_ref, w_out_ref, b_out_ref,
                 h0_ref, c0_ref,
                 out_ref, hN_ref, cN_ref,
                 xg_sc, h_sc,
                 *, frames_per_step, num_nodes, rnn_size, kp, gp, kv, gv):
  N, H = num_nodes, rnn_size
  step = pl.program_id(0)

  # ---- chunk-batched precompute (off the serial per-frame path) ------------
  # Neighbor max over lane slices of the lane-dense (RcF, K*G) grid blocks.
  gp_flat = gridp_ref[...]                              # (RcF, KP*GP)
  social = gp_flat[:, :gp]
  for k in range(1, kp):
    social = jnp.maximum(social, gp_flat[:, k * gp:(k + 1) * gp])
  gv_flat = gridv_ref[...]                              # (RcF, KV*GV)
  social_veh = gv_flat[:, :gv]
  for k in range(1, kv):
    social_veh = jnp.maximum(social_veh, gv_flat[:, k * gv:(k + 1) * gv])

  # Embedding = sum of three zero-padded matmuls (no in-kernel concatenate).
  emb = jnp.maximum(
      jnp.dot(nodes_ref[...], w_in_ref[...], preferred_element_type=jnp.float32)
      + jnp.dot(social, w_t_ref[...], preferred_element_type=jnp.float32)
      + jnp.dot(social_veh, w_tv_ref[...], preferred_element_type=jnp.float32)
      + b_emb_ref[...], 0.0)                            # (RcF, 3E)
  # TODO(synk): nn.Dropout treated as identity (eval-mode forward).

  # Input-to-gate matmul hoisted out of the recurrence; fused LSTM biases.
  xg_sc[...] = (jnp.dot(emb, w_ih_ref[...], preferred_element_type=jnp.float32)
                + b_gates_ref[...])                     # (RcF, 4H)

  # ---- sequential LSTM recurrence over frames in this chunk -----------------
  # State lives directly in the hN/cN output refs (constant block index =>
  # VMEM-resident across all grid steps). Initialize once from h0/c0.
  @pl.when(step == 0)
  def _():
    hN_ref[...] = h0_ref[...]
    cN_ref[...] = c0_ref[...]

  w_hh = w_hh_ref[...]             # hoisted out of the frame loop
  h = hN_ref[...]
  c = cN_ref[...]

  # frames_per_step is capped small (<=8): static slices, bounded unroll.
  for i in range(frames_per_step):
    gates = xg_sc[i * N:(i + 1) * N, :] + jnp.dot(
        h, w_hh, preferred_element_type=jnp.float32)    # (N, 4H)
    # Gates reordered (i,f,o,g): one wide sigmoid over 3H lanes + one tanh.
    sig = jax.nn.sigmoid(gates[:, :3 * H])
    g_g = jnp.tanh(gates[:, 3 * H:])
    i_g = sig[:, :H]
    f_g = sig[:, H:2 * H]
    o_g = sig[:, 2 * H:]
    c = f_g * c + i_g * g_g
    h = o_g * jnp.tanh(c)
    h_sc[i * N:(i + 1) * N, :] = h

  hN_ref[...] = h
  cN_ref[...] = c

  # Output projection once per chunk, lane-dense (O padded to 128): one
  # unmasked full-width store per chunk instead of a masked O=5 store per frame.
  out_ref[...] = (jnp.dot(h_sc[...], w_out_ref[...],
                          preferred_element_type=jnp.float32)
                  + b_out_ref[...])


# ------------------------------ chunk sizing --------------------------------
def _choose_fc(F, N, fixed_bytes, per_frame_bytes, budget_bytes, cap=8):
  """Largest divisor Fc of F (Fc <= cap) whose row count Fc*N is sublane-aligned
  (multiple of 8) or Fc == F, such that fixed + Fc*per_frame fits the budget.
  Budget is conservative for v7x's 64 MiB physical / 32 MiB scoped VMEM."""
  cands = [c for c in range(1, F + 1)
           if F % c == 0 and c <= max(cap, 1)
           and ((c * N) % 8 == 0 or c == F)]
  if not cands:
    cands = [F]
  fitting = [c for c in cands
             if fixed_bytes + c * per_frame_bytes <= budget_bytes]
  return max(fitting) if fitting else min(cands)


# -------------------------------- wrapper -----------------------------------
def collision_grid_forward(nodes, grid_ttc, grid_ttc_veh, h0, c0, params):
  f32 = jnp.float32
  nodes = nodes.astype(f32)
  grid_ttc = grid_ttc.astype(f32)
  grid_ttc_veh = grid_ttc_veh.astype(f32)
  h0 = h0.astype(f32)
  c0 = c0.astype(f32)

  F, N, IN = nodes.shape
  KP, GP = grid_ttc.shape[2], grid_ttc.shape[3]
  KV, GV = grid_ttc_veh.shape[2], grid_ttc_veh.shape[3]
  H = h0.shape[1]
  E = params["w_in"].shape[1]
  O = params["w_out"].shape[1]
  O_pad = ((O + 127) // 128) * 128
  R = F * N
  # TODO(synk): assumes KV >= 1 (the PyTorch "no vehicles in grid" zero branch
  # and per-frame variable PedsList/look_up presence are not modeled).

  # ---- trace-time parameter fusion (free; runs once under XLA) --------------
  # Per-branch embedding weights zero-padded to 3E output columns so the kernel
  # sums three lane-aligned matmuls instead of concatenating features.
  w_in_p = jnp.zeros((IN, 3 * E), f32).at[:, :E].set(params["w_in"].astype(f32))
  w_t_p = jnp.zeros((GP, 3 * E), f32).at[:, E:2 * E].set(params["w_t"].astype(f32))
  w_tv_p = jnp.zeros((GV, 3 * E), f32).at[:, 2 * E:].set(params["w_tv"].astype(f32))
  b_emb = jnp.concatenate(
      [params["b_in"], params["b_t"], params["b_tv"]], axis=-1).astype(f32)

  # Reorder gate columns (i,f,g,o) -> (i,f,o,g) and fuse the two LSTM biases.
  def reorder(x):
    i_, f_, g_, o_ = jnp.split(x, 4, axis=-1)
    return jnp.concatenate([i_, f_, o_, g_], axis=-1)

  w_ih = reorder(params["w_ih"]).astype(f32)
  w_hh = reorder(params["w_hh"]).astype(f32)
  b_gates = reorder(params["b_ih"] + params["b_hh"]).astype(f32)

  # Lane-dense output projection weights (pad O -> O_pad).
  w_out_p = jnp.zeros((H, O_pad), f32).at[:, :O].set(params["w_out"].astype(f32))
  b_out_p = jnp.zeros((1, O_pad), f32).at[:, :O].set(params["b_out"].astype(f32))

  # Lane-dense flat (frame*node)-row views of the inputs.
  nodes_r = nodes.reshape(R, IN)
  gridp_r = grid_ttc.reshape(R, KP * GP)
  gridv_r = grid_ttc_veh.reshape(R, KV * GV)

  # ---- VMEM-aware chunk selection (conservative for v7x) --------------------
  B = 4  # bytes per f32
  fixed_bytes = 2 * B * (                      # double-buffered resident blocks
      IN * 3 * E + GP * 3 * E + GV * 3 * E + 3 * E      # emb weights + bias
      + 3 * E * 4 * H + 4 * H                           # w_ih + fused gate bias
      + H * 4 * H                                       # w_hh
      + H * O_pad + O_pad                               # w_out_p + b_out_p
      + 4 * N * H)                                      # h0, c0, hN, cN
  per_frame_bytes = B * N * (
      2 * (IN + KP * GP + KV * GV + O_pad)              # double-buffered I/O
      + 4 * H + H)                                      # xg + h_chunk scratch
  Fc = _choose_fc(F, N, fixed_bytes, per_frame_bytes,
                  budget_bytes=20 << 20, cap=8)
  RcF = Fc * N

  out_flat, h_final, c_final = pl.pallas_call(
      functools.partial(fused_kernel, frames_per_step=Fc, num_nodes=N,
                        rnn_size=H, kp=KP, gp=GP, kv=KV, gv=GV),
      out_shape=(
          jax.ShapeDtypeStruct((R, O_pad), f32),   # lane-dense flat outputs
          jax.ShapeDtypeStruct((N, H), f32),       # final hidden state
          jax.ShapeDtypeStruct((N, H), f32),       # final cell state
      ),
      grid_spec=pltpu.PrefetchScalarGridSpec(
          num_scalar_prefetch=0,
          grid=(F // Fc,),
          in_specs=[
              pl.BlockSpec((RcF, IN), lambda s: (s, 0)),
              pl.BlockSpec((RcF, KP * GP), lambda s: (s, 0)),
              pl.BlockSpec((RcF, KV * GV), lambda s: (s, 0)),
              pl.BlockSpec((IN, 3 * E), lambda s: (0, 0)),
              pl.BlockSpec((GP, 3 * E), lambda s: (0, 0)),
              pl.BlockSpec((GV, 3 * E), lambda s: (0, 0)),
              pl.BlockSpec((1, 3 * E), lambda s: (0, 0)),
              pl.BlockSpec((3 * E, 4 * H), lambda s: (0, 0)),
              pl.BlockSpec((1, 4 * H), lambda s: (0, 0)),
              pl.BlockSpec((H, 4 * H), lambda s: (0, 0)),
              pl.BlockSpec((H, O_pad), lambda s: (0, 0)),
              pl.BlockSpec((1, O_pad), lambda s: (0, 0)),
              pl.BlockSpec((N, H), lambda s: (0, 0)),
              pl.BlockSpec((N, H), lambda s: (0, 0)),
          ],
          out_specs=(
              pl.BlockSpec((RcF, O_pad), lambda s: (s, 0)),
              pl.BlockSpec((N, H), lambda s: (0, 0)),   # VMEM-resident carry
              pl.BlockSpec((N, H), lambda s: (0, 0)),   # VMEM-resident carry
          ),
          scratch_shapes=[pltpu.VMEM((RcF, 4 * H), f32),   # x_gates chunk
                          pltpu.VMEM((RcF, H), f32)]),     # hidden-state chunk
      compiler_params=pltpu.CompilerParams(
          dimension_semantics=("arbitrary",),   # sequential state carry
          vmem_limit_bytes=32 << 20),
  )(nodes_r, gridp_r, gridv_r, w_in_p, w_t_p, w_tv_p, b_emb,
    w_ih, b_gates, w_hh, w_out_p, b_out_p, h0, c0)

  return out_flat[:, :O].reshape(F, N, O), h_final, c_final


# ----------------------- pure-JAX reference (for check) ---------------------
def reference_forward(nodes, grid_ttc, grid_ttc_veh, h0, c0, p):
  h, c = h0, c0
  H = h0.shape[1]
  outs = []
  for f in range(nodes.shape[0]):
    x = nodes[f]
    social = grid_ttc[f].max(axis=1)
    social_veh = grid_ttc_veh[f].max(axis=1)
    x_emb = jnp.maximum(x @ p["w_in"] + p["b_in"], 0.0)
    t_emb = jnp.maximum(social @ p["w_t"] + p["b_t"], 0.0)
    tv_emb = jnp.maximum(social_veh @ p["w_tv"] + p["b_tv"], 0.0)
    cat = jnp.concatenate([x_emb, t_emb, tv_emb], axis=-1)
    gates = cat @ p["w_ih"] + p["b_ih"] + h @ p["w_hh"] + p["b_hh"]
    i_g = jax.nn.sigmoid(gates[:, :H])
    f_g = jax.nn.sigmoid(gates[:, H:2 * H])
    g_g = jnp.tanh(gates[:, 2 * H:3 * H])
    o_g = jax.nn.sigmoid(gates[:, 3 * H:])
    c = f_g * c + i_g * g_g
    h = o_g * jnp.tanh(c)
    outs.append(h @ p["w_out"] + p["b_out"])
  return jnp.stack(outs), h, c


# ----------------------------------- main ------------------------------------
if __name__ == "__main__":
  # args-implied sizes (small, deterministic)
  seq_length = 3          # -> F = seq_length - 1 frames processed
  F = seq_length - 1
  N = 8                   # numNodes (len(look_up))
  IN = 2                  # input_size (positions x, y)
  E = 16                  # embedding_size
  H = 32                  # rnn_size
  O = 5                   # output_size (bivariate Gaussian params)
  num_sector, num_TTC, num_TTC_veh = 8, 3, 2
  GP = num_TTC * num_sector        # 24
  GV = num_TTC_veh * num_sector    # 16
  KP, KV = 8, 4                    # neighbor counts in the TTC grids

  key = jax.random.PRNGKey(0)
  ks = jax.random.split(key, 20)

  def normal(k, shape, scale=0.1):
    return (scale * jax.random.normal(k, shape)).astype(jnp.float32)

  params = {
      "w_in":  normal(ks[0], (IN, E)),   "b_in":  normal(ks[1], (1, E)),
      "w_t":   normal(ks[2], (GP, E)),   "b_t":   normal(ks[3], (1, E)),
      "w_tv":  normal(ks[4], (GV, E)),   "b_tv":  normal(ks[5], (1, E)),
      "w_ih":  normal(ks[6], (3 * E, 4 * H)), "b_ih": normal(ks[7], (1, 4 * H)),
      "w_hh":  normal(ks[8], (H, 4 * H)),     "b_hh": normal(ks[9], (1, 4 * H)),
      "w_out": normal(ks[10], (H, O)),   "b_out": normal(ks[11], (1, O)),
  }

  nodes = normal(ks[12], (F, N, IN), scale=1.0)
  grid_ttc = jnp.abs(normal(ks[13], (F, N, KP, GP), scale=1.0))
  grid_ttc_veh = jnp.abs(normal(ks[14], (F, N, KV, GV), scale=1.0))
  h0 = normal(ks[15], (N, H), scale=0.5)
  c0 = normal(ks[16], (N, H), scale=0.5)

  outs, h_final, c_final = collision_grid_forward(
      nodes, grid_ttc, grid_ttc_veh, h0, c0, params)
  jax.block_until_ready((outs, h_final, c_final))

  ref_outs, ref_h, ref_c = reference_forward(
      nodes, grid_ttc, grid_ttc_veh, h0, c0, params)
  assert np.allclose(np.asarray(outs), np.asarray(ref_outs), atol=1e-4, rtol=1e-4)
  assert np.allclose(np.asarray(h_final), np.asarray(ref_h), atol=1e-4, rtol=1e-4)
  assert np.allclose(np.asarray(c_final), np.asarray(ref_c), atol=1e-4, rtol=1e-4)

  print("KERNEL_OK")
</pallas_src>

<mosaic_0001>
module attributes {stable_mosaic.version = 11 : i64} {
  func.func @fused_kernel(%arg0: i32, %arg1: memref<16x2xf32, #tpu.memory_space<vmem>>, %arg2: memref<16x192xf32, #tpu.memory_space<vmem>>, %arg3: memref<16x64xf32, #tpu.memory_space<vmem>>, %arg4: memref<2x48xf32, #tpu.memory_space<vmem>>, %arg5: memref<24x48xf32, #tpu.memory_space<vmem>>, %arg6: memref<16x48xf32, #tpu.memory_space<vmem>>, %arg7: memref<1x48xf32, #tpu.memory_space<vmem>>, %arg8: memref<48x128xf32, #tpu.memory_space<vmem>>, %arg9: memref<1x128xf32, #tpu.memory_space<vmem>>, %arg10: memref<32x128xf32, #tpu.memory_space<vmem>>, %arg11: memref<32x128xf32, #tpu.memory_space<vmem>>, %arg12: memref<1x128xf32, #tpu.memory_space<vmem>>, %arg13: memref<8x32xf32, #tpu.memory_space<vmem>>, %arg14: memref<8x32xf32, #tpu.memory_space<vmem>>, %arg15: memref<16x128xf32, #tpu.memory_space<vmem>>, %arg16: memref<8x32xf32, #tpu.memory_space<vmem>>, %arg17: memref<8x32xf32, #tpu.memory_space<vmem>>, %arg18: memref<16x128xf32, #tpu.memory_space<vmem>>, %arg19: memref<16x32xf32, #tpu.memory_space<vmem>>) attributes {dimension_semantics = [#tpu.dimension_semantics<arbitrary>], iteration_bounds = array<i64: 1>, scalar_prefetch = 0 : i64, scratch_operands = 2 : i64, tpu.core_type = #tpu.core_type<tc>, window_params = [{transform_indices = @transform_0, window_bounds = array<i64: 16, 2>}, {transform_indices = @transform_1, window_bounds = array<i64: 16, 192>}, {transform_indices = @transform_2, window_bounds = array<i64: 16, 64>}, {pipeline_mode = #tpu.pipeline_mode<synchronous>, transform_indices = @transform_3, window_bounds = array<i64: 2, 48>}, {pipeline_mode = #tpu.pipeline_mode<synchronous>, transform_indices = @transform_4, window_bounds = array<i64: 24, 48>}, {pipeline_mode = #tpu.pipeline_mode<synchronous>, transform_indices = @transform_5, window_bounds = array<i64: 16, 48>}, {pipeline_mode = #tpu.pipeline_mode<synchronous>, transform_indices = @transform_6, window_bounds = array<i64: 1, 48>}, {pipeline_mode = #tpu.pipeline_mode<synchronous>, transform_indices = @transform_7, window_bounds = array<i64: 48, 128>}, {pipeline_mode = #tpu.pipeline_mode<synchronous>, transform_indices = @transform_8, window_bounds = array<i64: 1, 128>}, {pipeline_mode = #tpu.pipeline_mode<synchronous>, transform_indices = @transform_9, window_bounds = array<i64: 32, 128>}, {pipeline_mode = #tpu.pipeline_mode<synchronous>, transform_indices = @transform_10, window_bounds = array<i64: 32, 128>}, {pipeline_mode = #tpu.pipeline_mode<synchronous>, transform_indices = @transform_11, window_bounds = array<i64: 1, 128>}, {pipeline_mode = #tpu.pipeline_mode<synchronous>, transform_indices = @transform_12, window_bounds = array<i64: 8, 32>}, {pipeline_mode = #tpu.pipeline_mode<synchronous>, transform_indices = @transform_13, window_bounds = array<i64: 8, 32>}, {transform_indices = @transform_14, window_bounds = array<i64: 16, 128>}, {pipeline_mode = #tpu.pipeline_mode<synchronous>, transform_indices = @transform_15, window_bounds = array<i64: 8, 32>}, {pipeline_mode = #tpu.pipeline_mode<synchronous>, transform_indices = @transform_16, window_bounds = array<i64: 8, 32>}]} {
    %c0 = arith.constant 0 : index
    %c0_0 = arith.constant 0 : index
    %0 = vector.load %arg2[%c0, %c0_0] : memref<16x192xf32, #tpu.memory_space<vmem>>, vector<16x192xf32>
    %1 = vector.extract_strided_slice %0 {offsets = [0, 0], sizes = [16, 24], strides = [1, 1]} : vector<16x192xf32> to vector<16x24xf32>
    %2 = vector.extract_strided_slice %0 {offsets = [0, 24], sizes = [16, 24], strides = [1, 1]} : vector<16x192xf32> to vector<16x24xf32>
    %3 = arith.maximumf %1, %2 : vector<16x24xf32>
    %4 = vector.extract_strided_slice %0 {offsets = [0, 48], sizes = [16, 24], strides = [1, 1]} : vector<16x192xf32> to vector<16x24xf32>
    %5 = arith.maximumf %3, %4 : vector<16x24xf32>
    %6 = vector.extract_strided_slice %0 {offsets = [0, 72], sizes = [16, 24], strides = [1, 1]} : vector<16x192xf32> to vector<16x24xf32>
    %7 = arith.maximumf %5, %6 : vector<16x24xf32>
    %8 = vector.extract_strided_slice %0 {offsets = [0, 96], sizes = [16, 24], strides = [1, 1]} : vector<16x192xf32> to vector<16x24xf32>
    %9 = arith.maximumf %7, %8 : vector<16x24xf32>
    %10 = vector.extract_strided_slice %0 {offsets = [0, 120], sizes = [16, 24], strides = [1, 1]} : vector<16x192xf32> to vector<16x24xf32>
    %11 = arith.maximumf %9, %10 : vector<16x24xf32>
    %12 = vector.extract_strided_slice %0 {offsets = [0, 144], sizes = [16, 24], strides = [1, 1]} : vector<16x192xf32> to vector<16x24xf32>
    %13 = arith.maximumf %11, %12 : vector<16x24xf32>
    %14 = vector.extract_strided_slice %0 {offsets = [0, 168], sizes = [16, 24], strides = [1, 1]} : vector<16x192xf32> to vector<16x24xf32>
    %15 = arith.maximumf %13, %14 : vector<16x24xf32>
    %c0_1 = arith.constant 0 : index
    %c0_2 = arith.constant 0 : index
    %16 = vector.load %arg3[%c0_1, %c0_2] : memref<16x64xf32, #tpu.memory_space<vmem>>, vector<16x64xf32>
    %17 = vector.extract_strided_slice %16 {offsets = [0, 0], sizes = [16, 16], strides = [1, 1]} : vector<16x64xf32> to vector<16x16xf32>
    %18 = vector.extract_strided_slice %16 {offsets = [0, 16], sizes = [16, 16], strides = [1, 1]} : vector<16x64xf32> to vector<16x16xf32>
    %19 = arith.maximumf %17, %18 : vector<16x16xf32>
    %20 = vector.extract_strided_slice %16 {offsets = [0, 32], sizes = [16, 16], strides = [1, 1]} : vector<16x64xf32> to vector<16x16xf32>
    %21 = arith.maximumf %19, %20 : vector<16x16xf32>
    %22 = vector.extract_strided_slice %16 {offsets = [0, 48], sizes = [16, 16], strides = [1, 1]} : vector<16x64xf32> to vector<16x16xf32>
    %23 = arith.maximumf %21, %22 : vector<16x16xf32>
    %c0_3 = arith.constant 0 : index
    %c0_4 = arith.constant 0 : index
    %24 = vector.load %arg1[%c0_3, %c0_4] : memref<16x2xf32, #tpu.memory_space<vmem>>, vector<16x2xf32>
    %c0_5 = arith.constant 0 : index
    %c0_6 = arith.constant 0 : index
    %25 = vector.load %arg4[%c0_5, %c0_6] : memref<2x48xf32, #tpu.memory_space<vmem>>, vector<2x48xf32>
    %cst = arith.constant dense<0.000000e+00> : vector<16x48xf32>
    %26 = tpu.matmul %24, %25, %cst {dimension_numbers = #tpu.dot_dimension_numbers<[1], [0], [0], [1], [0, 0, 1, 1], [], []>} : vector<16x2xf32>, vector<2x48xf32>, vector<16x48xf32> -> vector<16x48xf32>
    %c0_7 = arith.constant 0 : index
    %c0_8 = arith.constant 0 : index
    %27 = vector.load %arg5[%c0_7, %c0_8] : memref<24x48xf32, #tpu.memory_space<vmem>>, vector<24x48xf32>
    %cst_9 = arith.constant dense<0.000000e+00> : vector<16x48xf32>
    %28 = tpu.matmul %15, %27, %cst_9 {dimension_numbers = #tpu.dot_dimension_numbers<[1], [0], [0], [1], [0, 0, 1, 1], [], []>} : vector<16x24xf32>, vector<24x48xf32>, vector<16x48xf32> -> vector<16x48xf32>
    %29 = arith.addf %26, %28 : vector<16x48xf32>
    %c0_10 = arith.constant 0 : index
    %c0_11 = arith.constant 0 : index
    %30 = vector.load %arg6[%c0_10, %c0_11] : memref<16x48xf32, #tpu.memory_space<vmem>>, vector<16x48xf32>
    %cst_12 = arith.constant dense<0.000000e+00> : vector<16x48xf32>
    %31 = tpu.matmul %23, %30, %cst_12 {dimension_numbers = #tpu.dot_dimension_numbers<[1], [0], [0], [1], [0, 0, 1, 1], [], []>} : vector<16x16xf32>, vector<16x48xf32>, vector<16x48xf32> -> vector<16x48xf32>
    %32 = arith.addf %29, %31 : vector<16x48xf32>
    %c0_13 = arith.constant 0 : index
    %c0_14 = arith.constant 0 : index
    %33 = vector.load %arg7[%c0_13, %c0_14] : memref<1x48xf32, #tpu.memory_space<vmem>>, vector<1x48xf32>
    %34 = vector.broadcast %33 : vector<1x48xf32> to vector<16x48xf32>
    %35 = arith.addf %32, %34 : vector<16x48xf32>
    %cst_15 = arith.constant 0.000000e+00 : f32
    %36 = vector.broadcast %cst_15 : f32 to vector<16x48xf32>
    %37 = arith.maximumf %35, %36 : vector<16x48xf32>
    %c0_16 = arith.constant 0 : index
    %c0_17 = arith.constant 0 : index
    %38 = vector.load %arg8[%c0_16, %c0_17] : memref<48x128xf32, #tpu.memory_space<vmem>>, vector<48x128xf32>
    %cst_18 = arith.constant dense<0.000000e+00> : vector<16x128xf32>
    %39 = tpu.matmul %37, %38, %cst_18 {dimension_numbers = #tpu.dot_dimension_numbers<[1], [0], [0], [1], [0, 0, 1, 1], [], []>} : vector<16x48xf32>, vector<48x128xf32>, vector<16x128xf32> -> vector<16x128xf32>
    %c0_19 = arith.constant 0 : index
    %c0_20 = arith.constant 0 : index
    %40 = vector.load %arg9[%c0_19, %c0_20] : memref<1x128xf32, #tpu.memory_space<vmem>>, vector<1x128xf32>
    %41 = vector.broadcast %40 : vector<1x128xf32> to vector<16x128xf32>
    %42 = arith.addf %39, %41 : vector<16x128xf32>
    %c0_21 = arith.constant 0 : index
    %c0_22 = arith.constant 0 : index
    %43 = vector.load %arg18[%c0_21, %c0_22] : memref<16x128xf32, #tpu.memory_space<vmem>>, vector<16x128xf32>
    tpu.vector_store %arg18[%c0_21, %c0_22], %42 {strides = array<i32>} : memref<16x128xf32, #tpu.memory_space<vmem>>, vector<16x128xf32>,
    %c0_i32 = arith.constant 0 : i32
    %44 = arith.cmpi eq, %arg0, %c0_i32 : i32
    %45 = arith.extui %44 : i1 to i32
    %c0_i32_23 = arith.constant 0 : i32
    %46 = arith.cmpi ne, %45, %c0_i32_23 : i32
    scf.if %46 {
      %c0_54 = arith.constant 0 : index
      %c0_55 = arith.constant 0 : index
      %99 = vector.load %arg13[%c0_54, %c0_55] : memref<8x32xf32, #tpu.memory_space<vmem>>, vector<8x32xf32>
      %c0_56 = arith.constant 0 : index
      %c0_57 = arith.constant 0 : index
      %100 = vector.load %arg16[%c0_56, %c0_57] : memref<8x32xf32, #tpu.memory_space<vmem>>, vector<8x32xf32>
      tpu.vector_store %arg16[%c0_56, %c0_57], %99 {strides = array<i32>} : memref<8x32xf32, #tpu.memory_space<vmem>>, vector<8x32xf32>,
      %c0_58 = arith.constant 0 : index
      %c0_59 = arith.constant 0 : index
      %101 = vector.load %arg14[%c0_58, %c0_59] : memref<8x32xf32, #tpu.memory_space<vmem>>, vector<8x32xf32>
      %c0_60 = arith.constant 0 : index
      %c0_61 = arith.constant 0 : index
      %102 = vector.load %arg17[%c0_60, %c0_61] : memref<8x32xf32, #tpu.memory_space<vmem>>, vector<8x32xf32>
      tpu.vector_store %arg17[%c0_60, %c0_61], %101 {strides = array<i32>} : memref<8x32xf32, #tpu.memory_space<vmem>>, vector<8x32xf32>,
    } else {
    }
    %c0_24 = arith.constant 0 : index
    %c0_25 = arith.constant 0 : index
    %47 = vector.load %arg10[%c0_24, %c0_25] : memref<32x128xf32, #tpu.memory_space<vmem>>, vector<32x128xf32>
    %c0_26 = arith.constant 0 : index
    %c0_27 = arith.constant 0 : index
    %48 = vector.load %arg16[%c0_26, %c0_27] : memref<8x32xf32, #tpu.memory_space<vmem>>, vector<8x32xf32>
    %c0_28 = arith.constant 0 : index
    %c0_29 = arith.constant 0 : index
    %49 = vector.load %arg17[%c0_28, %c0_29] : memref<8x32xf32, #tpu.memory_space<vmem>>, vector<8x32xf32>
    %c0_30 = arith.constant 0 : index
    %c0_31 = arith.constant 0 : index
    %50 = vector.load %arg18[%c0_30, %c0_31] : memref<16x128xf32, #tpu.memory_space<vmem>>, vector<8x128xf32>
    %cst_32 = arith.constant dense<0.000000e+00> : vector<8x128xf32>
    %51 = tpu.matmul %48, %47, %cst_32 {dimension_numbers = #tpu.dot_dimension_numbers<[1], [0], [0], [1], [0, 0, 1, 1], [], []>} : vector<8x32xf32>, vector<32x128xf32>, vector<8x128xf32> -> vector<8x128xf32>
    %52 = arith.addf %50, %51 : vector<8x128xf32>
    %53 = vector.extract_strided_slice %52 {offsets = [0, 0], sizes = [8, 96], strides = [1, 1]} : vector<8x128xf32> to vector<8x96xf32>
    %54 = arith.negf %53 : vector<8x96xf32>
    %55 = math.exp %54 : vector<8x96xf32>
    %cst_33 = arith.constant 1.000000e+00 : f32
    %56 = vector.broadcast %cst_33 : f32 to vector<8x96xf32>
    %57 = arith.addf %56, %55 : vector<8x96xf32>
    %58 = arith.divf %56, %57 : vector<8x96xf32>
    %59 = vector.extract_strided_slice %52 {offsets = [0, 96], sizes = [8, 32], strides = [1, 1]} : vector<8x128xf32> to vector<8x32xf32>
    %60 = math.tanh %59 : vector<8x32xf32>
    %61 = vector.extract_strided_slice %58 {offsets = [0, 0], sizes = [8, 32], strides = [1, 1]} : vector<8x96xf32> to vector<8x32xf32>
    %62 = vector.extract_strided_slice %58 {offsets = [0, 32], sizes = [8, 32], strides = [1, 1]} : vector<8x96xf32> to vector<8x32xf32>
    %63 = vector.extract_strided_slice %58 {offsets = [0, 64], sizes = [8, 32], strides = [1, 1]} : vector<8x96xf32> to vector<8x32xf32>
    %64 = arith.mulf %62, %49 : vector<8x32xf32>
    %65 = arith.mulf %61, %60 : vector<8x32xf32>
    %66 = arith.addf %64, %65 : vector<8x32xf32>
    %67 = math.tanh %66 : vector<8x32xf32>
    %68 = arith.mulf %63, %67 : vector<8x32xf32>
    %c0_34 = arith.constant 0 : index
    %c0_35 = arith.constant 0 : index
    %69 = vector.load %arg19[%c0_34, %c0_35] : memref<16x32xf32, #tpu.memory_space<vmem>>, vector<8x32xf32>
    tpu.vector_store %arg19[%c0_34, %c0_35], %68 {strides = array<i32>} : memref<16x32xf32, #tpu.memory_space<vmem>>, vector<8x32xf32>,
    %c8 = arith.constant 8 : index
    %c0_36 = arith.constant 0 : index
    %70 = vector.load %arg18[%c8, %c0_36] : memref<16x128xf32, #tpu.memory_space<vmem>>, vector<8x128xf32>
    %cst_37 = arith.constant dense<0.000000e+00> : vector<8x128xf32>
    %71 = tpu.matmul %68, %47, %cst_37 {dimension_numbers = #tpu.dot_dimension_numbers<[1], [0], [0], [1], [0, 0, 1, 1], [], []>} : vector<8x32xf32>, vector<32x128xf32>, vector<8x128xf32> -> vector<8x128xf32>
    %72 = arith.addf %70, %71 : vector<8x128xf32>
    %73 = vector.extract_strided_slice %72 {offsets = [0, 0], sizes = [8, 96], strides = [1, 1]} : vector<8x128xf32> to vector<8x96xf32>
    %74 = arith.negf %73 : vector<8x96xf32>
    %75 = math.exp %74 : vector<8x96xf32>
    %cst_38 = arith.constant 1.000000e+00 : f32
    %76 = vector.broadcast %cst_38 : f32 to vector<8x96xf32>
    %77 = arith.addf %76, %75 : vector<8x96xf32>
    %78 = arith.divf %76, %77 : vector<8x96xf32>
    %79 = vector.extract_strided_slice %72 {offsets = [0, 96], sizes = [8, 32], strides = [1, 1]} : vector<8x128xf32> to vector<8x32xf32>
    %80 = math.tanh %79 : vector<8x32xf32>
    %81 = vector.extract_strided_slice %78 {offsets = [0, 0], sizes = [8, 32], strides = [1, 1]} : vector<8x96xf32> to vector<8x32xf32>
    %82 = vector.extract_strided_slice %78 {offsets = [0, 32], sizes = [8, 32], strides = [1, 1]} : vector<8x96xf32> to vector<8x32xf32>
    %83 = vector.extract_strided_slice %78 {offsets = [0, 64], sizes = [8, 32], strides = [1, 1]} : vector<8x96xf32> to vector<8x32xf32>
    %84 = arith.mulf %82, %66 : vector<8x32xf32>
    %85 = arith.mulf %81, %80 : vector<8x32xf32>
    %86 = arith.addf %84, %85 : vector<8x32xf32>
    %87 = math.tanh %86 : vector<8x32xf32>
    %88 = arith.mulf %83, %87 : vector<8x32xf32>
    %c8_39 = arith.constant 8 : index
    %c0_40 = arith.constant 0 : index
    %89 = vector.load %arg19[%c8_39, %c0_40] : memref<16x32xf32, #tpu.memory_space<vmem>>, vector<8x32xf32>
    tpu.vector_store %arg19[%c8_39, %c0_40], %88 {strides = array<i32>} : memref<16x32xf32, #tpu.memory_space<vmem>>, vector<8x32xf32>,
    %c0_41 = arith.constant 0 : index
    %c0_42 = arith.constant 0 : index
    %90 = vector.load %arg16[%c0_41, %c0_42] : memref<8x32xf32, #tpu.memory_space<vmem>>, vector<8x32xf32>
    tpu.vector_store %arg16[%c0_41, %c0_42], %88 {strides = array<i32>} : memref<8x32xf32, #tpu.memory_space<vmem>>, vector<8x32xf32>,
    %c0_43 = arith.constant 0 : index
    %c0_44 = arith.constant 0 : index
    %91 = vector.load %arg17[%c0_43, %c0_44] : memref<8x32xf32, #tpu.memory_space<vmem>>, vector<8x32xf32>
    tpu.vector_store %arg17[%c0_43, %c0_44], %86 {strides = array<i32>} : memref<8x32xf32, #tpu.memory_space<vmem>>, vector<8x32xf32>,
    %c0_45 = arith.constant 0 : index
    %c0_46 = arith.constant 0 : index
    %92 = vector.load %arg19[%c0_45, %c0_46] : memref<16x32xf32, #tpu.memory_space<vmem>>, vector<16x32xf32>
    %c0_47 = arith.constant 0 : index
    %c0_48 = arith.constant 0 : index
    %93 = vector.load %arg11[%c0_47, %c0_48] : memref<32x128xf32, #tpu.memory_space<vmem>>, vector<32x128xf32>
    %cst_49 = arith.constant dense<0.000000e+00> : vector<16x128xf32>
    %94 = tpu.matmul %92, %93, %cst_49 {dimension_numbers = #tpu.dot_dimension_numbers<[1], [0], [0], [1], [0, 0, 1, 1], [], []>} : vector<16x32xf32>, vector<32x128xf32>, vector<16x128xf32> -> vector<16x128xf32>
    %c0_50 = arith.constant 0 : index
    %c0_51 = arith.constant 0 : index
    %95 = vector.load %arg12[%c0_50, %c0_51] : memref<1x128xf32, #tpu.memory_space<vmem>>, vector<1x128xf32>
    %96 = vector.broadcast %95 : vector<1x128xf32> to vector<16x128xf32>
    %97 = arith.addf %94, %96 : vector<16x128xf32>
    %c0_52 = arith.constant 0 : index
    %c0_53 = arith.constant 0 : index
    %98 = vector.load %arg15[%c0_52, %c0_53] : memref<16x128xf32, #tpu.memory_space<vmem>>, vector<16x128xf32>
    tpu.vector_store %arg15[%c0_52, %c0_53], %97 {strides = array<i32>} : memref<16x128xf32, #tpu.memory_space<vmem>>, vector<16x128xf32>,
    return
  }
  func.func @transform_0(%arg0: i32) -> (i32, i32) {
    %c0_i32 = arith.constant 0 : i32
    %c0_i32_0 = arith.constant 0 : i32
    return %arg0, %c0_i32 : i32, i32
  }
  func.func @transform_1(%arg0: i32) -> (i32, i32) {
    %c0_i32 = arith.constant 0 : i32
    %c0_i32_0 = arith.constant 0 : i32
    return %arg0, %c0_i32 : i32, i32
  }
  func.func @transform_2(%arg0: i32) -> (i32, i32) {
    %c0_i32 = arith.constant 0 : i32
    %c0_i32_0 = arith.constant 0 : i32
    return %arg0, %c0_i32 : i32, i32
  }
  func.func @transform_3(%arg0: i32) -> (i32, i32) {
    %c0_i32 = arith.constant 0 : i32
    %c0_i32_0 = arith.constant 0 : i32
    %c0_i32_1 = arith.constant 0 : i32
    return %c0_i32, %c0_i32_0 : i32, i32
  }
  func.func @transform_4(%arg0: i32) -> (i32, i32) {
    %c0_i32 = arith.constant 0 : i32
    %c0_i32_0 = arith.constant 0 : i32
    %c0_i32_1 = arith.constant 0 : i32
    return %c0_i32, %c0_i32_0 : i32, i32
  }
  func.func @transform_5(%arg0: i32) -> (i32, i32) {
    %c0_i32 = arith.constant 0 : i32
    %c0_i32_0 = arith.constant 0 : i32
    %c0_i32_1 = arith.constant 0 : i32
    return %c0_i32, %c0_i32_0 : i32, i32
  }
  func.func @transform_6(%arg0: i32) -> (i32, i32) {
    %c0_i32 = arith.constant 0 : i32
    %c0_i32_0 = arith.constant 0 : i32
    %c0_i32_1 = arith.constant 0 : i32
    return %c0_i32, %c0_i32_0 : i32, i32
  }
  func.func @transform_7(%arg0: i32) -> (i32, i32) {
    %c0_i32 = arith.constant 0 : i32
    %c0_i32_0 = arith.constant 0 : i32
    %c0_i32_1 = arith.constant 0 : i32
    return %c0_i32, %c0_i32_0 : i32, i32
  }
  func.func @transform_8(%arg0: i32) -> (i32, i32) {
    %c0_i32 = arith.constant 0 : i32
    %c0_i32_0 = arith.constant 0 : i32
    %c0_i32_1 = arith.constant 0 : i32
    return %c0_i32, %c0_i32_0 : i32, i32
  }
  func.func @transform_9(%arg0: i32) -> (i32, i32) {
    %c0_i32 = arith.constant 0 : i32
    %c0_i32_0 = arith.constant 0 : i32
    %c0_i32_1 = arith.constant 0 : i32
    return %c0_i32, %c0_i32_0 : i32, i32
  }
  func.func @transform_10(%arg0: i32) -> (i32, i32) {
    %c0_i32 = arith.constant 0 : i32
    %c0_i32_0 = arith.constant 0 : i32
    %c0_i32_1 = arith.constant 0 : i32
    return %c0_i32, %c0_i32_0 : i32, i32
  }
  func.func @transform_11(%arg0: i32) -> (i32, i32) {
    %c0_i32 = arith.constant 0 : i32
    %c0_i32_0 = arith.constant 0 : i32
    %c0_i32_1 = arith.constant 0 : i32
    return %c0_i32, %c0_i32_0 : i32, i32
  }
  func.func @transform_12(%arg0: i32) -> (i32, i32) {
    %c0_i32 = arith.constant 0 : i32
    %c0_i32_0 = arith.constant 0 : i32
    %c0_i32_1 = arith.constant 0 : i32
    return %c0_i32, %c0_i32_0 : i32, i32
  }
  func.func @transform_13(%arg0: i32) -> (i32, i32) {
    %c0_i32 = arith.constant 0 : i32
    %c0_i32_0 = arith.constant 0 : i32
    %c0_i32_1 = arith.constant 0 : i32
    return %c0_i32, %c0_i32_0 : i32, i32
  }
  func.func @transform_14(%arg0: i32) -> (i32, i32) {
    %c0_i32 = arith.constant 0 : i32
    %c0_i32_0 = arith.constant 0 : i32
    return %arg0, %c0_i32 : i32, i32
  }
  func.func @transform_15(%arg0: i32) -> (i32, i32) {
    %c0_i32 = arith.constant 0 : i32
    %c0_i32_0 = arith.constant 0 : i32
    %c0_i32_1 = arith.constant 0 : i32
    return %c0_i32, %c0_i32_0 : i32, i32
  }
  func.func @transform_16(%arg0: i32) -> (i32, i32) {
    %c0_i32 = arith.constant 0 : i32
    %c0_i32_0 = arith.constant 0 : i32
    %c0_i32_1 = arith.constant 0 : i32
    return %c0_i32, %c0_i32_0 : i32, i32
  }
}

</mosaic_0001>

<bundles_post_ra>
// kernel: tpu_custom_call.1
= control target key start
LH: loop header
LB: loop body
LE: loop exit
PB: predicated region body
PF: predicated region fallthrough
CT: control target
= control target key end

     0   :  { %s1291_s0 = inlined_call_operand.vmem [shape: f32[16,2], index: 0, kind: input, shape index: {}]   ;;  %s1292_s1 = inlined_call_operand.hbm [shape: f32[16,192], index: 1, kind: input, shape index: {}]   ;;  %s1293_s2 = inlined_call_operand.vmem [shape: f32[16,64], index: 2, kind: input, shape index: {}]   ;;  %s1294_s3 = inlined_call_operand.hbm [shape: f32[2,48], index: 3, kind: input, shape index: {}]   ;;  %s1295_s4 = inlined_call_operand.hbm [shape: f32[24,48], index: 4, kind: input, shape index: {}]   ;;  %s1296_s5 = inlined_call_operand.hbm [shape: f32[16,48], index: 5, kind: input, shape index: {}]   ;;  %s1297_s6 = inlined_call_operand.hbm [shape: f32[1,48], index: 6, kind: input, shape index: {}]   ;;  %s1298_s7 = inlined_call_operand.hbm [shape: f32[48,128], index: 7, kind: input, shape index: {}]   ;;  %s1299_s8 = inlined_call_operand.vmem [shape: f32[1,128], index: 8, kind: input, shape index: {}]   ;;  %s1300_s9 = inlined_call_operand.hbm [shape: f32[32,128], index: 9, kind: input, shape index: {}]   ;;  %s1301_s10 = inlined_call_operand.hbm [shape: f32[32,128], index: 10, kind: input, shape index: {}]   ;;  %s1302_s11 = inlined_call_operand.vmem [shape: f32[1,128], index: 11, kind: input, shape index: {}]   ;;  %s1303_s12 = inlined_call_operand.vmem [shape: f32[8,32], index: 12, kind: input, shape index: {}]   ;;  %s1304_s13 = inlined_call_operand.hbm [shape: f32[8,32], index: 13, kind: input, shape index: {}]   ;;  %s1305_s14 = inlined_call_operand.hbm [shape: f32[16,128], index: 14, kind: output, shape index: {0}]   ;;  %s1306_s15 = inlined_call_operand.hbm [shape: f32[8,32], index: 15, kind: output, shape index: {1}]   ;;  %s1307_s16 = inlined_call_operand.hbm [shape: f32[8,32], index: 16, kind: output, shape index: {2}]  }
   0x1   :  { %1309 = sst [smem:[#allocation30_spill]] %s1291_s0 }
   0x2   :  { %22 = vsyncpa [#allocation5], 0 }
   0x3   :  { %23 = vsyncpa [#allocation8], 0 }
   0x4   :  { %24 = vsyncpa [#allocation11], 0 }
   0x5   :  { %25 = vsyncpa [#allocation14], 0 }
   0x6   :  { %26 = vsyncpa [#allocation17], 0 }
   0x7   :  { %27 = vsyncpa [#allocation6], 0  ;;  %s51_s23 = sshll.u32 %s1294_s3, 4  ;;  %s52_s23 = int_to_ptr.hbm [resolvable:$true] %s51_s23 }
   0x8   :  { %28 = vsyncpa [#allocation21], 0  ;;  %s1057_s24 = smov [#allocation7]   ;;  %s74_s28 = sshll.u32 %s1296_s5, 4  ;;  %s75_s28 = int_to_ptr.hbm [resolvable:$true] %s74_s28 }
   0x9   :  { %s53_s25 = sshll.u32 %s1057_s24, 4  ;;  %s1058_s29 = smov [#allocation10]   ;;  %s54_s25 = int_to_ptr.vmem [resolvable:$true] %s53_s25 }
   0xa   :  { %56 = dma.hbm_to_vmem [thread:$0]  %s52_s23, 32, %s54_s25, [#allocation8]  }
   0xb   :  { %s76_s30 = sshll.u32 %s1058_s29, 4  ;;  %s98_s18 = sshll.u32 %s1298_s7, 4  ;;  %s77_s30 = int_to_ptr.vmem [resolvable:$true] %s76_s30  ;;  %s99_s18 = int_to_ptr.hbm [resolvable:$true] %s98_s18 }
   0xc   :  { %s1059_s3 = smov 128   ;;  %s1060_s19 = smov 8  }
   0xd   :  { %82 = dma.hbm_to_vmem [thread:$0]  %s75_s28, 256, %s77_s30, [#allocation11], %s1059_s3, %s1059_s3, %s1060_s19  }
   0xe   :  { %s126_s22 = sshll.u32 %s1301_s10, 4  ;;  %s1061_s5 = smov [#allocation13]   ;;  %s127_s22 = int_to_ptr.hbm [resolvable:$true] %s126_s22 }
   0xf   :  { %s100_s23 = sshll.u32 %s1061_s5, 4  ;;  %s1062_s7 = smov [#allocation16]   ;;  %s101_s23 = int_to_ptr.vmem [resolvable:$true] %s100_s23 }
  0x10   :  { %106 = dma.hbm_to_vmem [thread:$0]  %s99_s18, 768, %s101_s23, [#allocation14], %s1059_s3, %s1059_s3, %s1060_s19  }
  0x11   :  { %s128_s24 = sshll.u32 %s1062_s7, 4  ;;  %s35_s27 = sshll.u32 %s1292_s1, 4  ;;  %s129_s24 = int_to_ptr.vmem [resolvable:$true] %s128_s24  ;;  %s36_s27 = int_to_ptr.hbm [resolvable:$true] %s35_s27 }
  0x12   :  { %134 = dma.hbm_to_vmem [thread:$0]  %s127_s22, 512, %s129_s24, [#allocation17], %s1059_s3, %s1059_s3, %s1060_s19  }
  0x13   :  { %s1063_s10 = smov [#allocation4]   ;;  %s61_s0 = sshll.u32 %s1295_s4, 4  ;;  %s62_s0 = int_to_ptr.hbm [resolvable:$true] %s61_s0 }
  0x14   :  { %s37_s28 = sshll.u32 %s1063_s10, 4  ;;  %s1064_s17 = smov 256   ;;  %s38_s28 = int_to_ptr.vmem [resolvable:$true] %s37_s28 }
  0x15   :  { %s1065_s18 = smov 16   ;;  %s1066_s20 = smov [#allocation9]  }
  0x16   :  { %43 = dma.hbm_to_vmem [thread:$0]  %s36_s27, 512, %s38_s28, [#allocation5], %s1064_s17, %s1064_s17, %s1065_s18  }
  0x17   :  { %s63_s21 = sshll.u32 %s1066_s20, 4  ;;  %s88_s23 = sshll.u32 %s1297_s6, 4  ;;  %s64_s21 = int_to_ptr.vmem [resolvable:$true] %s63_s21  ;;  %s89_s23 = int_to_ptr.hbm [resolvable:$true] %s88_s23 }
  0x18   :  { %69 = dma.hbm_to_vmem [thread:$0]  %s62_s0, 384, %s64_s21, [#allocation8], %s1059_s3, %s1059_s3, %s1060_s19  }
  0x19   :  { %s113_s4 = sshll.u32 %s1300_s9, 4  ;;  %s1067_s24 = smov [#allocation12]   ;;  %s114_s4 = int_to_ptr.hbm [resolvable:$true] %s113_s4 }
  0x1a   :  { %s90_s25 = sshll.u32 %s1067_s24, 4  ;;  %s1068_s26 = smov [#allocation15]   ;;  %s91_s25 = int_to_ptr.vmem [resolvable:$true] %s90_s25 }
  0x1b   :  { %93 = dma.hbm_to_vmem [thread:$0]  %s89_s23, 16, %s91_s25, [#allocation11]  }
  0x1c   :  { %s115_s27 = sshll.u32 %s1068_s26, 4  ;;  %s144_s6 = sshll.u32 %s1304_s13, 4  ;;  %s116_s27 = int_to_ptr.vmem [resolvable:$true] %s115_s27  ;;  %s145_s6 = int_to_ptr.hbm [resolvable:$true] %s144_s6 }
  0x1d   :  { %121 = dma.hbm_to_vmem [thread:$0]  %s114_s4, 512, %s116_s27, [#allocation14], %s1059_s3, %s1059_s3, %s1060_s19  }
  0x1e   :  { %s1069_s29 = smov [#allocation18]  }
  0x1f   :  { %s146_s30 = sshll.u32 %s1069_s29, 4  ;;  %s147_s30 = int_to_ptr.vmem [resolvable:$true] %s146_s30 }
  0x20   :  { %149 = dma.hbm_to_vmem [thread:$0]  %s145_s6, 128, %s147_s30, [#allocation17]  }
  0x21   :  { %1043 = dma.done.wait [#allocation5], 512  }
  0x22   :  { %1044 = vsyncadd [#allocation5], 4294966784 }
  0x23   :  { %1045 = dma.done.wait [#allocation8], 416  }
  0x24   :  { %1046 = vsyncadd [#allocation8], 4294966880 }
  0x25   :  { %1047 = dma.done.wait [#allocation11], 272  }
  0x26   :  { %1048 = vsyncadd [#allocation11], 4294967024 }
  0x27   :  { %1049 = dma.done.wait [#allocation14], 1280  }
  0x28   :  { %1050 = vsyncadd [#allocation14], 4294966016 }
  0x29   :  { %1051 = dma.done.wait [#allocation17], 640  }
  0x2a   :  { %1052 = vsyncadd [#allocation17], 4294966656  ;;  %v186_v0 = vld [vmem:[#allocation4] sm:$0xff]  ;;  %s1070_s9 = smov 56   ;;  %s1071_s13 = smov 104   ;;  %v257_v1 = vld [vmem:[%s1293_s2] sm:$0xff] }
  0x2b   :  { %208 = vrot.lane.b32.xlu1 %v186_v0, %s1070_s9  ;;  %192 = vrot.lane.b32.xlu0 %v186_v0, %s1071_s13  ;;  %s1072_s0 = smov 32   ;;  %s1073_s20 = smov 112   ;;  %v187_v2 = vld [vmem:[#allocation4 + $0x8] sm:$0xff]  ;;  %v355_v4 = vld [vmem:[#allocation10] sm:$0xff]  ;;  %v188_v5 = vld [vmem:[#allocation4 + $0x10] sm:$0xff]  ;;  %vm328_vm0 = vcmask 1041408  }
  0x2c   :  { %216 = vrot.lane.b32.xlu2 %v186_v0, %s1072_s0  ;;  %s1074_s21 = smov 80   ;;  %s1075_s1 = smov 96   ;;  %v356_v3 = vld [vmem:[#allocation10 + $0x8] sm:$0xff]  ;;  %v290_v6 = vld [vmem:[#allocation9 + $0x10] sm:$0xff]  ;;  %v289_v8 = vld [vmem:[#allocation9 + $0x8] sm:$0xff]  ;;  %vm321_vm1 = vcmask 15360  }
  0x2d   :  { %s1076_s5 = smov 88   ;;  %378 = vmatpush.msra.mxu2 %v356_v3  ;;  %311 = vmatpush.msra.mxu0 %v290_v6  ;;  %v288_v9 = vld [vmem:[#allocation9] sm:$0xff]  ;;  %v287_v10 = vld [vmem:[#allocation7] sm:$0x3]  ;;  %s1310_s7 = sld [smem:[#allocation30_spill]]  ;;  %v258_v12 = vld [vmem:[%s1293_s2 + $0x8] sm:$0xff] }
  0x2e   :  { %695 = vmatpush.msk.msra.mxu1 %vm328_vm0, %v287_v10  ;;  %v189_v14 = vld [vmem:[#allocation4 + $0x18] sm:$0xff]  ;;  %vm357_vm2 = vcmask 130048   ;;  %vm234_vm3 = vcmask 64512   ;;  %vm291_vm4 = vcmask 195584   ;;  %v401_v50 = vld [vmem:[#allocation13 + $0x20] sm:$0xff]  ;;  %v400_v52 = vld [vmem:[#allocation13 + $0x18] sm:$0xff] }
  0x2f   :  { %379 = vmatpush.msra.mxu2 %v355_v4  ;;  %312 = vmatpush.msra.mxu0 %v289_v8  ;;  %v402_v43 = vld [vmem:[#allocation13 + $0x28] sm:$0xff]  ;;  %v399_v56 = vld [vmem:[#allocation13 + $0x10] sm:$0xff]  ;;  %v450_v59 = vld [vmem:[#allocation15 + $0x10] sm:$0xff]  ;;  %vm444_vm5 = vcmask 261120   ;;  %vm407_vm6 = vcmask 392192  }
  0x30   :  { %424 = vmatpush.msra.mxu3 %v402_v43  ;;  %v451_v54 = vld [vmem:[#allocation15 + $0x18] sm:$0xff]  ;;  %v449_v3 = vld [vmem:[#allocation15 + $0x8] sm:$0xff]  ;;  %v448_v4 = vld [vmem:[#allocation15] sm:$0xff] }
  0x31   :  { %313 = vmatpush.msra.mxu0 %v288_v9  ;;  %471 = vmatpush.msrb.mxu1 %v451_v54  ;;  %v398_v60 = vld [vmem:[#allocation13 + $0x8] sm:$0xff] }
  0x32   :  { %425 = vmatpush.msra.mxu3 %v401_v50  ;;  %541 = vmatpush.msrb.mxu2 %v451_v54  ;;  %v600_v54 = vld [vmem:[#allocation16] sm:$0xff] }
  0x33   :  { %261 = vrot.lane.b32.xlu1 %v257_v1, %s1073_s20  ;;  %200 = vrot.lane.b32.xlu0 %v186_v0, %s1074_s21  ;;  %v285_v11 = vld [vmem:[%s1310_s7] sm:$0xff]  ;;  %v286_v62 = vld [vmem:[%s1310_s7 + $0x8] sm:$0xff] }
  0x34   :  { %269 = vrot.lane.b32.xlu2 %v257_v1, %s1075_s1  ;;  %696 = vmatmul.msk.f32.vlgmr.msra.gmra.mxu1 %vm321_vm1, %v285_v11  ;;  %v736_v11 = vld [vmem:[#allocation12] ss:$0 sm:$0xff] }
  0x35   :  { %426 = vmatpush.msra.mxu3 %v400_v52  ;;  %472 = vmatpush.msrb.mxu1 %v450_v59  ;;  %v602_v52 = vld [vmem:[#allocation16 + $0x10] sm:$0xff] }
  0x36   :  { %542 = vmatpush.msrb.mxu2 %v450_v59  ;;  %v1266_v59 = vld [vmem:[%s1302_s11] ss:$0 sm:$0xff]  ;;  %s1078_s11 = smov [#allocation20]  }
  0x37   :  { %427 = vmatpush.msra.mxu3 %v399_v56  ;;  %473 = vmatpush.msrb.mxu1 %v449_v3  ;;  %s657_s29 = sshll.u32 %s1078_s11, 4  ;;  %s658_s29 = int_to_ptr.vmem [resolvable:$true] %s657_s29 }
  0x38   :  { %543 = vmatpush.msrb.mxu2 %v449_v3 }
  0x39   :  { %428 = vmatpush.msra.mxu3 %v398_v60  ;;  %474 = vmatpush.msrb.mxu1 %v448_v4 }
  0x3a   :  { %544 = vmatpush.msrb.mxu2 %v448_v4 }
  0x3b   :  { %228 = vrot.lane.b32.xlu1 %v187_v2, %s1060_s19  ;;  %226 = vrot.lane.b32.xlu0 %v186_v0, %s1060_s19 }
  0x3c   :  { %277 = vrot.lane.b32.xlu2 %v257_v1, %s1074_s21  ;;  %697 = vmatmul.msk.f32.gmra.mxu1 %vm321_vm1, %v286_v62 }
  0x43   :  { %241 = vrot.lane.b32.xlu0 %v187_v2, %s1073_s20  ;;  %249 = vrot.lane.b32.xlu1 %v187_v2, %s1076_s5  ;;  %v443_v2 = vld [vmem:[%s1303_s12] sm:$0xff] }
  0x44   :  { %194 = vrot.lane.b32.xlu2 %v188_v5, %s1071_s13  ;;  %445 = vst.msk [vmem:[#allocation20] sm:$0xff] %vm444_vm5, %v443_v2  ;;  %s659_s13 = sshll.u32 %s1306_s15, 4  ;;  %s645_s15 = sshll.u32 %s1305_s14, 4  ;;  %s660_s13 = int_to_ptr.hbm [resolvable:$true] %s659_s13  ;;  %s646_s15 = int_to_ptr.hbm [resolvable:$true] %s645_s15 }
  0x4b   :  { %202 = vrot.lane.b32.xlu0 %v188_v5, %s1074_s21  ;;  %210 = vrot.lane.b32.xlu1 %v188_v5, %s1070_s9  ;;  %v452_v6 = vld [vmem:[#allocation20] sm:$0xff] }
  0x4c   :  { %263 = vrot.lane.b32.xlu2 %v258_v12, %s1073_s20  ;;  %702 = vmatmul.msk.f32.vlgmr.msrb.gmra.mxu1 %vm444_vm5, %v452_v6 }
  0x53   :  { %218 = vrot.lane.b32.xlu0 %v188_v5, %s1072_s0  ;;  %271 = vrot.lane.b32.xlu1 %v258_v12, %s1075_s1 }
  0x54   :  { %230 = vrot.lane.b32.xlu2 %v188_v5, %s1060_s19 }
  0x5b   :  { %232 = vrot.lane.b32.xlu0 %v189_v14, %s1060_s19  ;;  %279 = vrot.lane.b32.xlu1 %v258_v12, %s1074_s21  ;;  %s670_s21 = sshll.u32 %s1307_s16, 4  ;;  %s671_s21 = int_to_ptr.hbm [resolvable:$true] %s670_s21 }
  0x5c   :  { %243 = vrot.lane.b32.xlu2 %v189_v14, %s1073_s20 }
  0x63   :  { %251 = vrot.lane.b32.xlu0 %v189_v14, %s1076_s5 }
  0x86   :  { %v217_v7 = vpop.permute.xlu2 %216 }
  0x8e   :  { %v270_v13 = vpop.permute.xlu2 %269 }
  0x96   :  { %v278_v20 = vpop.permute.xlu2 %277 }
  0x9d   :  { %v209_v15 = vpop.permute.xlu1 %208  ;;  %v193_v16 = vpop.permute.xlu0 %192 }
  0x9e   :  { %v198_v21 = vmax.f32 %v186_v0, %v193_v16  ;;  %v195_v35 = vpop.permute.xlu2 %194  ;;  %v397_v0 = vld [vmem:[#allocation13] sm:$0xff] }
  0x9f   :  { %v199_v40 = vmax.f32 %v188_v5, %v195_v35  ;;  %429 = vmatpush.msra.mxu3 %v397_v0  ;;  %v446_v5 = vld [vmem:[#allocation18] sm:$0xff] }
  0xa0   :  { %447 = vst.msk [vmem:[#allocation22] sm:$0xff] %vm444_vm5, %v446_v5 }
  0xa5   :  { %v262_v17 = vpop.permute.xlu1 %261  ;;  %v201_v18 = vpop.permute.xlu0 %200 }
  0xa6   :  { %v267_v19 = vmax.f32 %v257_v1, %v262_v17  ;;  %v206_v23 = vmax.f32 %v198_v21, %v201_v18  ;;  %v264_v38 = vpop.permute.xlu2 %263 }
  0xa7   :  { %v268_v47 = vmax.f32 %v258_v12, %v264_v38 }
  0xa8   :  { %v275_v22 = vmax.f32 %v267_v19, %v270_v13  ;;  %v214_v27 = vmax.f32 %v206_v23, %v209_v15  ;;  %v737_v23 = vld [vmem:[%s1299_s8] ss:$0 sm:$0xff]  ;;  %s1077_s8 = smov 64  }
  0xaa   :  { %v283_v24 = vmax.f32 %v275_v22, %v278_v20  ;;  %v222_v29 = vmax.f32 %v214_v27, %v217_v7  ;;  %v453_v7 = vld [vmem:[#allocation22] sm:$0xff] }
  0xab   :  { %501 = vrot.lane.b32.xlu2 %v453_v7, %s1072_s0 }
  0xac   :  { %698 = vmatmul.msk.f32.vlgmr.msra.gmra.mxu2 %vm357_vm2, %v283_v24 }
  0xad   :  { %v229_v25 = vpop.permute.xlu1 %228  ;;  %v227_v26 = vpop.permute.xlu0 %226 }
  0xae   :  { %v235_v28 = vsel %vm234_vm3, %v227_v26, %v229_v25  ;;  %v231_v44 = vpop.permute.xlu2 %230 }
  0xaf   :  { %v239_v30 = vmax.f32 %v222_v29, %v235_v28 }
  0xb1   :  { %v349_v8 = vpop.f32.mrf.mxu1 }
  0xb5   :  { %v242_v31 = vpop.permute.xlu0 %241  ;;  %v250_v32 = vpop.permute.xlu1 %249 }
  0xb6   :  { %v247_v33 = vmax.f32 %v239_v30, %v242_v31  ;;  %v244_v57 = vpop.permute.xlu2 %243 }
  0xb8   :  { %v255_v34 = vmax.f32 %v247_v33, %v250_v32 }
  0xb9   :  { %v352_v16 = vpop.f32.mrf.mxu1 }
  0xba   :  { %693 = vmatmul.msk.f32.vlgmr.msra.gmra.mxu0 %vm291_vm4, %v255_v34 }
  0xbd   :  { %v203_v36 = vpop.permute.xlu0 %202  ;;  %v211_v37 = vpop.permute.xlu1 %210 }
  0xbe   :  { %v207_v41 = vmax.f32 %v199_v40, %v203_v36 }
  0xc0   :  { %v215_v46 = vmax.f32 %v207_v41, %v211_v37 }
  0xc5   :  { %v219_v39 = vpop.permute.xlu0 %218  ;;  %v272_v42 = vpop.permute.xlu1 %271 }
  0xc6   :  { %v223_v48 = vmax.f32 %v215_v46, %v219_v39  ;;  %v276_v49 = vmax.f32 %v268_v47, %v272_v42 }
  0xc9   :  { %v476_v25 = vpop.f32.mrf.mxu1 }
  0xcd   :  { %v233_v45 = vpop.permute.xlu0 %232  ;;  %v280_v53 = vpop.permute.xlu1 %279 }
  0xce   :  { %v236_v51 = vsel %vm234_vm3, %v231_v44, %v233_v45  ;;  %v284_v55 = vmax.f32 %v276_v49, %v280_v53  ;;  %v601_v53 = vld [vmem:[#allocation16 + $0x8] sm:$0xff] }
  0xcf   :  { %v240_v58 = vmax.f32 %v223_v48, %v236_v51  ;;  %v603_v51 = vld [vmem:[#allocation16 + $0x18] sm:$0xff] }
  0xd0   :  { %699 = vmatmul.msk.f32.gmra.mxu2 %vm357_vm2, %v284_v55  ;;  %626 = vmatpush.msrb.mxu0 %v603_v51 }
  0xd1   :  { %v248_v63 = vmax.f32 %v240_v58, %v244_v57  ;;  %708 = vmatpush.msra.mxu1 %v603_v51 }
  0xd2   :  { %627 = vmatpush.msrb.mxu0 %v602_v52 }
  0xd3   :  { %709 = vmatpush.msra.mxu1 %v602_v52 }
  0xd4   :  { %628 = vmatpush.msrb.mxu0 %v601_v53 }
  0xd5   :  { %v252_v61 = vpop.permute.xlu0 %251  ;;  %710 = vmatpush.msra.mxu1 %v601_v53 }
  0xd6   :  { %v256_v1 = vmax.f32 %v248_v63, %v252_v61  ;;  %629 = vmatpush.msrb.mxu0 %v600_v54 }
  0xd7   :  { %711 = vmatpush.msra.mxu1 %v600_v54 }
  0xd8   :  { %694 = vmatmul.msk.f32.gmra.mxu0 %vm291_vm4, %v256_v1 }
 0x105   :  { %v502_v44 = vpop.permute.xlu2 %501 }
 0x12f   :  { %v381_v12 = vpop.f32.mrf.mxu2 }
 0x137   :  { %v315_v9 = vpop.f32.mrf.mxu0 }
 0x138   :  { %v350_v10 = vadd.f32 %v349_v8, %v315_v9 }
 0x13a   :  { %v387_v13 = vadd.f32 %v381_v12, %v350_v10 }
 0x13c   :  { %v393_v14 = vadd.f32 %v736_v11, %v387_v13 }
 0x13e   :  { %v395_v15 = vmax.f32 %v393_v14, 0.0 }
 0x140   :  { %700 = vmatmul.msk.f32.vlgmr.msra.gmra.mxu3 %vm407_vm6, %v395_v15 }
 0x153   :  { %v384_v19 = vpop.f32.mrf.mxu2 }
 0x155   :  { %v318_v17 = vpop.f32.mrf.mxu0 }
 0x156   :  { %v353_v18 = vadd.f32 %v352_v16, %v318_v17 }
 0x158   :  { %v388_v20 = vadd.f32 %v384_v19, %v353_v18 }
 0x15a   :  { %v394_v21 = vadd.f32 %v736_v11, %v388_v20 }
 0x15c   :  { %v396_v22 = vmax.f32 %v394_v21, 0.0 }
 0x15e   :  { %701 = vmatmul.msk.f32.gmra.mxu3 %vm407_vm6, %v396_v22 }
 0x1c3   :  { %v431_v24 = vpop.f32.mrf.mxu3 }
 0x1c4   :  { %v432_v26 = vadd.f32 %v737_v23, %v431_v24 }
 0x1c6   :  { %v479_v27 = vadd.f32 %v476_v25, %v432_v26 }
 0x1c8   :  { %739 = vtanh.f32 %v479_v27  ;;  %v703_v29 = vmul.f32 -1.442695, %v479_v27 }
 0x1ca   :  { %741 = vpow2.f32 %v703_v29 }
 0x1ce   :  { %v740_v28 = vpop.eup %739 }
 0x1cf   :  { %506 = vrot.lane.b32.xlu1 %v740_v28, %s1072_s0 }
 0x1d0   :  { %v742_v30 = vpop.eup %741 }
 0x1d1   :  { %v483_v31 = vadd.f32 1.0, %v742_v30 }
 0x1d3   :  { %743 = vrcp.f32 %v483_v31  ;;  %v495_v37 = vand.u32 2147483648, %v483_v31  ;;  %vm489_vm8 = vweird.f32 %v483_v31  ;;  %v493_v38 = vand.u32 2147483647, %v483_v31 }
 0x1d5   :  { %v496_v40 = vor.u32 1.1754944e-38, %v495_v37  ;;  %vm494_vm10 = vcmp.eq.f32.partialorder %v493_v38, 8.507059e+37 }
 0x1d9   :  { %v744_v32 = vpop.eup %743 }
 0x1da   :  { %v485_v33 = vmul.f32 %v744_v32, %v483_v31  ;;  %vm490_vm7 = vweird.f32 %v744_v32 }
 0x1db   :  { %vm491_vm9 = vmor %vm489_vm8, %vm490_vm7 }
 0x1dc   :  { %v486_v34 = vsub.f32 1.0, %v485_v33 }
 0x1de   :  { %v487_v35 = vmul.f32 %v744_v32, %v486_v34 }
 0x1e0   :  { %v488_v36 = vadd.f32 %v744_v32, %v487_v35 }
 0x1e1   :  { %v434_v57 = vpop.f32.mrf.mxu3 }
 0x1e2   :  { %v492_v39 = vsel %vm491_vm9, %v744_v32, %v488_v36  ;;  %v435_v58 = vadd.f32 %v737_v23, %v434_v57 }
 0x1e3   :  { %v497_v41 = vsel %vm494_vm10, %v496_v40, %v492_v39 }
 0x1e4   :  { %v504_v45 = vmul.f32 %v502_v44, %v497_v41 }
 0x241   :  { %v507_v42 = vpop.permute.xlu1 %506 }
 0x242   :  { %v509_v43 = vmul.f32 %v507_v42, %v497_v41 }
 0x244   :  { %511 = vrot.lane.b32.xlu0 %v509_v43, %s1072_s0 }
 0x2b6   :  { %v512_v46 = vpop.permute.xlu0 %511 }
 0x2b7   :  { %v514_v47 = vadd.f32 %v512_v46, %v504_v45 }
 0x2b9   :  { %745 = vtanh.f32 %v514_v47 }
 0x2bf   :  { %v746_v48 = vpop.eup %745 }
 0x2c0   :  { %517 = vrot.lane.b32.xlu1 %v746_v48, %s1072_s0 }
 0x332   :  { %v518_v49 = vpop.permute.xlu1 %517 }
 0x333   :  { %v520_v50 = vmul.f32 %v518_v49, %v497_v41 }
 0x335   :  { %522 = vrot.lane.b32.xlu2 %v520_v50, %s1077_s8 }
 0x38f   :  { %v523_v55 = vpop.permute.xlu2 %522 }
 0x390   :  { %525 = vst.msk [vmem:[#allocation3] sm:$0xff] %vm444_vm5, %v523_v55  ;;  %704 = vmatmul.msk.f32.vlgmr.msrb.gmra.mxu2 %vm444_vm5, %v523_v55 }
 0x397   :  { %v598_v56 = vld [vmem:[#allocation3] sm:$0xff] }
 0x398   :  { %706 = vmatmul.msk.f32.vlgmr.msrb.gmra.mxu0 %vm444_vm5, %v598_v56 }
 0x413   :  { %v546_v60 = vpop.f32.mrf.mxu2 }
 0x414   :  { %v549_v61 = vadd.f32 %v546_v60, %v435_v58 }
 0x415   :  { %v631_v62 = vpop.f32.mrf.mxu0 }
 0x416   :  { %747 = vtanh.f32 %v549_v61  ;;  %v632_v63 = vadd.f32 %v1266_v59, %v631_v62  ;;  %v705_v1 = vmul.f32 -1.442695, %v549_v61 }
 0x418   :  { %637 = vst [vmem:[#allocation19] sm:$0xff] %v632_v63  ;;  %749 = vpow2.f32 %v705_v1 }
 0x41c   :  { %v748_v0 = vpop.eup %747 }
 0x41d   :  { %572 = vrot.lane.b32.xlu0 %v748_v0, %s1072_s0 }
 0x41e   :  { %v750_v2 = vpop.eup %749 }
 0x41f   :  { %v553_v3 = vadd.f32 1.0, %v750_v2 }
 0x421   :  { %751 = vrcp.f32 %v553_v3  ;;  %v565_v9 = vand.u32 2147483648, %v553_v3  ;;  %vm559_vm12 = vweird.f32 %v553_v3  ;;  %v563_v10 = vand.u32 2147483647, %v553_v3 }
 0x423   :  { %v566_v12 = vor.u32 1.1754944e-38, %v565_v9  ;;  %vm564_vm14 = vcmp.eq.f32.partialorder %v563_v10, 8.507059e+37 }
 0x427   :  { %v752_v4 = vpop.eup %751 }
 0x428   :  { %v555_v5 = vmul.f32 %v752_v4, %v553_v3  ;;  %vm560_vm11 = vweird.f32 %v752_v4 }
 0x429   :  { %vm561_vm13 = vmor %vm559_vm12, %vm560_vm11 }
 0x42a   :  { %v556_v6 = vsub.f32 1.0, %v555_v5 }
 0x42c   :  { %v557_v7 = vmul.f32 %v752_v4, %v556_v6 }
 0x42e   :  { %v558_v8 = vadd.f32 %v752_v4, %v557_v7 }
 0x430   :  { %v562_v11 = vsel %vm561_vm13, %v752_v4, %v558_v8 }
 0x431   :  { %v567_v14 = vsel %vm564_vm14, %v566_v12, %v562_v11 }
 0x432   :  { %v570_v16 = vmul.f32 %v567_v14, %v514_v47 }
 0x48f   :  { %v573_v13 = vpop.permute.xlu0 %572 }
 0x490   :  { %v575_v15 = vmul.f32 %v573_v13, %v567_v14 }
 0x492   :  { %577 = vrot.lane.b32.xlu1 %v575_v15, %s1072_s0 }
 0x504   :  { %v578_v17 = vpop.permute.xlu1 %577 }
 0x505   :  { %v580_v18 = vadd.f32 %v578_v17, %v570_v16 }
 0x507   :  { %753 = vtanh.f32 %v580_v18  ;;  %594 = vrot.lane.b32.xlu1 %v580_v18, %s1075_s1  ;;  %s1080_s1 = smov [#allocation19]  }
 0x508   :  { %s643_s5 = sshll.u32 %s1080_s1, 4  ;;  %s644_s5 = int_to_ptr.vmem [resolvable:$true] %s643_s5 }
 0x50d   :  { %v754_v19 = vpop.eup %753 }
 0x50e   :  { %583 = vrot.lane.b32.xlu2 %v754_v19, %s1072_s0  ;;  %s1079_s0 = smov [#allocation22]  }
 0x50f   :  { %s668_s17 = sshll.u32 %s1079_s0, 4  ;;  %s669_s17 = int_to_ptr.vmem [resolvable:$true] %s668_s17 }
 0x568   :  { %v584_v20 = vpop.permute.xlu2 %583 }
 0x569   :  { %v586_v21 = vmul.f32 %v584_v20, %v567_v14 }
 0x56b   :  { %588 = vrot.lane.b32.xlu0 %v586_v21, %s1077_s8 }
 0x579   :  { %v595_v22 = vpop.permute.xlu1 %594 }
 0x57a   :  { %597 = vst.msk [vmem:[#allocation22] sm:$0xff] %vm444_vm5, %v595_v22 }
 0x5dd   :  { %v589_v23 = vpop.permute.xlu0 %588 }
 0x5de   :  { %591 = vst.msk [vmem:[#allocation3 + $0x8] sm:$0xff] %vm444_vm5, %v589_v23 }
 0x5df   :  { %592 = vst.msk [vmem:[#allocation20] sm:$0xff] %vm444_vm5, %v589_v23 }
 0x5e0   :  { %662 = dma.vmem_to_hbm [thread:$0]  %s658_s29, 128, %s660_s13, [#allocation21]  }
 0x5e1   :  { %673 = dma.vmem_to_hbm [thread:$0]  %s669_s17, 128, %s671_s21, [#allocation21]  }
 0x5e5   :  { %v599_v24 = vld [vmem:[#allocation3 + $0x8] sm:$0xff] }
 0x5e6   :  { %707 = vmatmul.msk.f32.vlgmr.msra.gmra.mxu1 %vm444_vm5, %v599_v24 }
 0x663   :  { %v634_v25 = vpop.f32.mrf.mxu1 }
 0x664   :  { %v635_v26 = vadd.f32 %v1266_v59, %v634_v25 }
 0x666   :  { %638 = vst [vmem:[#allocation19 + $0x8] sm:$0xff] %v635_v26 }
 0x667   :  { %651 = dma.vmem_to_hbm [thread:$0]  %s644_s5, 256, %s646_s15, [#allocation6], %s1059_s3, %s1059_s3, %s1060_s19  }
 0x668   :  { %1053 = dma.done.wait [#allocation6], 256  }
 0x669   :  { %1054 = vsyncadd [#allocation6], 4294967040 }
 0x66a   :  { %1055 = dma.done.wait [#allocation21], 256  }
 0x66b   :  { %1056 = vsyncadd [#allocation21], 4294967040 }
 0x66c   :  { %686 = vsyncpa [#allocation5], 1 }
 0x66d   :  { %687 = vsyncpa [#allocation8], 1 }
 0x66e   :  { %688 = vsyncpa [#allocation11], 1 }
 0x66f   :  { %689 = vsyncpa [#allocation14], 1 }
 0x670   :  { %690 = vsyncpa [#allocation17], 1 }
 0x671   :  { %691 = vsyncpa [#allocation6], 1 }
 0x672   :  { %692 = vsyncpa [#allocation21], 1 }

</bundles_post_ra>
